<compile_context>
chip_gen: v7x
topology: tpu7x:2x2x1
jax: 0.10.0
libtpu: 0.0.40
codegen_flags: <defaults>
</compile_context>

<pallas_src>
import jax
import jax.numpy as jnp
from jax.experimental import pallas as pl
from jax.experimental.pallas import tpu as pltpu

_LANES = 128      # lane width of a vreg
_SUBLANES = 8     # sublane depth of a vreg
_MAX_BLOCK_ROWS = 1024   # 1024 x 128 x 4 B = 512 KiB per tile


def _umatrix_copy_kernel(u_ref, o_ref):
    # Identity "forward": materialize the parameter tile as the output tile.
    o_ref[...] = u_ref[...]


def _padded_rows(n_freedofs: int) -> int:
    """Rows of the lane-dense [rows, 128] slab, padded to a multiple of 8."""
    rows = pl.cdiv(n_freedofs, _LANES)
    return pl.cdiv(rows, _SUBLANES) * _SUBLANES


@jax.custom_vjp
def _umatrix_identity(u_padded):
    """Pallas identity over the lane-dense [rows, 128] parameter slab."""
    rows, lanes = u_padded.shape
    block_rows = min(rows, _MAX_BLOCK_ROWS)
    grid = (pl.cdiv(rows, block_rows),)
    return pl.pallas_call(
        _umatrix_copy_kernel,
        out_shape=jax.ShapeDtypeStruct((rows, lanes), u_padded.dtype),
        grid_spec=pltpu.PrefetchScalarGridSpec(
            num_scalar_prefetch=0,
            grid=grid,
            in_specs=[pl.BlockSpec((block_rows, lanes), lambda i: (i, 0))],
            out_specs=pl.BlockSpec((block_rows, lanes), lambda i: (i, 0)),
        ),
        compiler_params=pltpu.CompilerParams(
            dimension_semantics=("parallel",)),
    )(u_padded)


def _umatrix_identity_fwd(u_padded):
    return _umatrix_identity(u_padded), None


def _umatrix_identity_bwd(_, g):
    # Identity backward: cotangent passes straight through (no kernel, no copy).
    return (g,)


_umatrix_identity.defvjp(_umatrix_identity_fwd, _umatrix_identity_bwd)


class UMatrixModelPallas:
    """JAX/Pallas equivalent of the PyTorch UMatrixModel."""

    def __init__(self, n_freedofs, uniform_lower_bound, uniform_upper_bound, key):
        self.n_freedofs = n_freedofs
        self.uniform_lower_bound = uniform_lower_bound
        self.uniform_upper_bound = uniform_upper_bound
        # Uniform(lo, hi) init, analogous to torch.distributions.Uniform.sample
        # (same distribution, different PRNG stream than torch).
        flat = jax.random.uniform(
            key,
            (n_freedofs,),
            dtype=jnp.float32,
            minval=uniform_lower_bound,
            maxval=uniform_upper_bound,
        )
        rows = _padded_rows(n_freedofs)
        padded = jnp.zeros((rows * _LANES,), jnp.float32).at[:n_freedofs].set(flat)
        # Lane-dense trainable parameter storage: [rows, 128].
        self.u_matrix = padded.reshape(rows, _LANES)

    @property
    def u_vector(self):
        """The logical length-N parameter vector (view of the padded slab)."""
        return self.u_matrix.reshape(-1)[: self.n_freedofs]

    def forward(self, x=None):
        # x is ignored, matching the PyTorch module.
        out_padded = _umatrix_identity(self.u_matrix)
        return out_padded.reshape(-1)[: self.n_freedofs]

    __call__ = forward


if __name__ == "__main__":
    key = jax.random.PRNGKey(0)
    # Arbitrary size (NOT a multiple of 128): padded internally to an (8,128)
    # lane-dense slab, sliced back to 1000 for the user-facing output.
    n_freedofs = 1000
    lower, upper = -1.0, 1.0

    model = UMatrixModelPallas(n_freedofs, lower, upper, key)

    # forward ignores x (as in the PyTorch module); pass a dummy input anyway.
    x = jax.random.normal(jax.random.PRNGKey(1), (2, 4), dtype=jnp.float32)
    u = model(x)
    jax.block_until_ready(u)

    # sanity: kernel output must equal the stored parameter exactly
    assert u.shape == (n_freedofs,)
    assert u.dtype == jnp.float32
    assert bool(jnp.array_equal(u, model.u_vector))
    assert bool(jnp.all((u >= lower) & (u <= upper)))

    # gradients flow to the parameter through the custom_vjp identity
    g = jax.grad(lambda p: jnp.sum(_umatrix_identity(p)))(model.u_matrix)
    jax.block_until_ready(g)
    assert g.shape == model.u_matrix.shape
    assert bool(jnp.array_equal(g, jnp.ones_like(model.u_matrix)))

    print("KERNEL_OK")
</pallas_src>

<mosaic_0001>
module attributes {stable_mosaic.version = 11 : i64} {
  func.func @_umatrix_copy_kernel(%arg0: i32, %arg1: memref<8x128xf32, #tpu.memory_space<vmem>>, %arg2: memref<8x128xf32, #tpu.memory_space<vmem>>) attributes {dimension_semantics = [#tpu.dimension_semantics<parallel>], iteration_bounds = array<i64: 1>, scalar_prefetch = 0 : i64, scratch_operands = 0 : i64, tpu.core_type = #tpu.core_type<tc>, window_params = [{transform_indices = @transform_0, window_bounds = array<i64: 8, 128>}, {transform_indices = @transform_1, window_bounds = array<i64: 8, 128>}]} {
    %c0 = arith.constant 0 : index
    %c0_0 = arith.constant 0 : index
    %0 = vector.load %arg1[%c0, %c0_0] : memref<8x128xf32, #tpu.memory_space<vmem>>, vector<8x128xf32>
    %c0_1 = arith.constant 0 : index
    %c0_2 = arith.constant 0 : index
    %1 = vector.load %arg2[%c0_1, %c0_2] : memref<8x128xf32, #tpu.memory_space<vmem>>, vector<8x128xf32>
    tpu.vector_store %arg2[%c0_1, %c0_2], %0 {strides = array<i32>} : memref<8x128xf32, #tpu.memory_space<vmem>>, vector<8x128xf32>,
    return
  }
  func.func @transform_0(%arg0: i32) -> (i32, i32) {
    %c0_i32 = arith.constant 0 : i32
    %c0_i32_0 = arith.constant 0 : i32
    return %arg0, %c0_i32 : i32, i32
  }
  func.func @transform_1(%arg0: i32) -> (i32, i32) {
    %c0_i32 = arith.constant 0 : i32
    %c0_i32_0 = arith.constant 0 : i32
    return %arg0, %c0_i32 : i32, i32
  }
}

</mosaic_0001>

<bundles_post_ra>
// kernel: tpu_custom_call.1
= control target key start
LH: loop header
LB: loop body
LE: loop exit
PB: predicated region body
PF: predicated region fallthrough
CT: control target
= control target key end

     0   :  { %6 = vsyncpa [#allocation3], 0  ;;  %s124_s0 = inlined_call_operand.hbm [shape: f32[8,128], index: 0, kind: input, shape index: {}]   ;;  %s125_s1 = inlined_call_operand.hbm [shape: f32[8,128], index: 1, kind: output, shape index: {}]  }
   0x1   :  { %7 = vsyncpa [#allocation4], 0  ;;  %s88_s6 = smov [#allocation2]   ;;  %s40_s10 = scalar_lea.hbm %s124_s0, 128 }
   0x2   :  { %s14_s7 = sshll.u32 %s88_s6, 4  ;;  %p41_p0 = scmp.ne.s32.totalorder %s124_s0, %s40_s10  ;;  %s15_s7 = int_to_ptr.vmem [resolvable:$true] %s14_s7 }
   0x3   :  { %p44_p1 = scmp.lt.u32.totalorder %s40_s10, %s124_s0 }
   0x5   :  { %p46_p2 = pnand %p44_p1, %p41_p0 }
   0x7   :  { %49 = shalt.err (!%p46_p2)
}
   0x8   :  { %s50_s15 = scalar_lea.vmem %s15_s7, 128  ;;  %p55_p4 = scmp.lt.s32.totalorder %s15_s7, %s15_s7 }
   0x9   :  { %p51_p3 = scmp.ne.s32.totalorder %s15_s7, %s50_s15  ;;  %p56_p5 = scmp.lt.s32.totalorder %s50_s15, %s50_s15 }
   0xb   :  { %p57_p6 = por %p56_p5, %p55_p4 }
   0xd   :  { %p58_p7 = pnand %p57_p6, %p51_p3 }
   0xf   :  { %61 = shalt.err (!%p58_p7)
}
  0x10   :  { %17 = dma.hbm_to_vmem [thread:$0]  %s124_s0, 128, %s15_s7, [#allocation3]  }
  0x11   :  { %84 = dma.done.wait [#allocation3], 128  }
  0x12   :  { %85 = vsyncadd [#allocation3], 4294967168  ;;  %s89_s18 = smov [#allocation5]   ;;  %v21_v0 = vld [vmem:[#allocation2] sm:$0xff] }
  0x13   :  { %s29_s19 = sshll.u32 %s89_s18, 4  ;;  %22 = vst [vmem:[#allocation5] sm:$0xff] %v21_v0  ;;  %s30_s19 = int_to_ptr.vmem [resolvable:$true] %s29_s19 }
  0x14   :  { %s62_s20 = scalar_lea.vmem %s30_s19, 128  ;;  %p67_p9 = scmp.lt.s32.totalorder %s30_s19, %s30_s19 }
  0x15   :  { %p63_p8 = scmp.ne.s32.totalorder %s30_s19, %s62_s20  ;;  %p68_p10 = scmp.lt.s32.totalorder %s62_s20, %s62_s20 }
  0x17   :  { %p69_p11 = por %p68_p10, %p67_p9 }
  0x19   :  { %p70_p12 = pnand %p69_p11, %p63_p8 }
  0x1b   :  { %73 = shalt.err (!%p70_p12)
}
  0x1c   :  { %s74_s23 = scalar_lea.hbm %s125_s1, 128 }
  0x1d   :  { %p75_p13 = scmp.ne.s32.totalorder %s125_s1, %s74_s23  ;;  %p78_p0 = scmp.lt.u32.totalorder %s74_s23, %s125_s1 }
  0x1f   :  { %p80_p1 = pnand %p78_p0, %p75_p13 }
  0x21   :  { %83 = shalt.err (!%p80_p1)
}
  0x22   :  { %32 = dma.vmem_to_hbm [thread:$0]  %s30_s19, 128, %s125_s1, [#allocation4]  }
  0x23   :  { %86 = dma.done.wait [#allocation4], 128  }
  0x24   :  { %87 = vsyncadd [#allocation4], 4294967168 }
  0x25   :  { %36 = vsyncpa [#allocation3], 1 }
  0x26   :  { %37 = vsyncpa [#allocation4], 1 }

</bundles_post_ra>
